<compile_context>
chip_gen: v7x
topology: tpu7x:2x2x1
jax: 0.10.0
libtpu: 0.0.40
codegen_flags: <defaults>
</compile_context>

<pallas_src>
import functools

import jax
import jax.numpy as jnp
import numpy as np
from jax.experimental import pallas as pl
from jax.experimental.pallas import tpu as pltpu

BETA1 = 0.9
BETA2 = 0.999
EPS = 1e-08  # unused by forward (kept for parity with the module signature)

# rows of the packed (8, C) state slab
ROW_M, ROW_V, ROW_EV, ROW_MU, ROW_MU2, ROW_AVG_VAR, ROW_VAR, ROW_PAD = range(8)


def _recorder_kernel(scal_ref, state_ref, x_ref, out_ref, sum_ref, sq_ref,
                     *, beta1, beta2):
    """grid = (C_blocks, N_blocks); N is the innermost (reduction) axis."""
    ni = pl.program_id(1)

    @pl.when(ni == 0)
    def _init():
        sum_ref[...] = jnp.zeros_like(sum_ref)
        sq_ref[...] = jnp.zeros_like(sq_ref)

    # hot path: single sweep over the x tile, two lane-wise accumulators.
    x = x_ref[...].astype(jnp.float32)                       # (TN, TC)
    sum_ref[...] += jnp.sum(x, axis=0, keepdims=True)        # (1, TC)
    sq_ref[...] += jnp.sum(x * x, axis=0, keepdims=True)     # (1, TC)

    @pl.when(ni == pl.num_programs(1) - 1)
    def _finalize():
        # scalars (SMEM f32): [N, 1/clamp(N), 1/clamp(N-1), 1/(1-b1^t), 1/(1-b2^t)]
        num_sample = scal_ref[0]
        inv_ns = scal_ref[1]
        inv_ns_m1 = scal_ref[2]
        bc1 = scal_ref[3]
        bc2 = scal_ref[4]

        s1 = sum_ref[...]
        s2 = sq_ref[...]
        gbar = s1 * inv_ns
        g2 = s2 * inv_ns
        # single-pass variance: sum((x - gbar)^2) = sum(x^2) - N * gbar^2
        ev_g = jnp.maximum(s2 - num_sample * gbar * gbar, 0.0) * inv_ns_m1

        m_new = beta1 * state_ref[ROW_M:ROW_M + 1, :] + (1.0 - beta1) * gbar
        v_new = beta2 * state_ref[ROW_V:ROW_V + 1, :] + (1.0 - beta2) * g2
        ev_new = beta2 * state_ref[ROW_EV:ROW_EV + 1, :] + (1.0 - beta2) * ev_g

        mu_hat = m_new * bc1
        mu2_hat = v_new * bc2
        avg_var_hat = ev_new * bc2
        var_hat = mu2_hat - mu_hat * mu_hat

        out_ref[ROW_M:ROW_M + 1, :] = m_new
        out_ref[ROW_V:ROW_V + 1, :] = v_new
        out_ref[ROW_EV:ROW_EV + 1, :] = ev_new
        out_ref[ROW_MU:ROW_MU + 1, :] = mu_hat
        out_ref[ROW_MU2:ROW_MU2 + 1, :] = mu2_hat
        out_ref[ROW_AVG_VAR:ROW_AVG_VAR + 1, :] = avg_var_hat
        out_ref[ROW_VAR:ROW_VAR + 1, :] = var_hat
        out_ref[ROW_PAD:ROW_PAD + 1, :] = jnp.zeros_like(m_new)


def _pick_tile(dim, target, align):
    """Largest tile <= target that is a multiple of `align` and divides `dim`
    (falls back to the full dim, which is always a legal block)."""
    if dim <= target:
        return dim
    t = (target // align) * align
    while t >= align:
        if dim % t == 0:
            return t
        t -= align
    return dim


def init_state(channel):
    return {
        "t": jnp.zeros((), jnp.float32),
        "stats": jnp.zeros((8, channel), jnp.float32),   # packed state slab
    }


def unpack_state(state):
    s = state["stats"]
    return {
        "t": state["t"],
        "m": s[ROW_M], "v": s[ROW_V], "ev": s[ROW_EV],
        "mu_hat": s[ROW_MU], "mu2_hat": s[ROW_MU2],
        "avg_var_hat": s[ROW_AVG_VAR], "var_hat": s[ROW_VAR],
    }


@jax.jit
def sync_single_statistic_recorder(g, state):
    """Forward pass. Returns (g, new_state). reduction='mean', world_size==1."""
    # TODO(synk): torch.distributed.all_reduce across hosts is identity here
    # (single device); multi-device would need shard_map + remote DMA.
    n, c = g.shape
    stats = state["stats"]

    t_new = state["t"] + 1.0
    num_sample = jnp.float32(n)                       # world_size == 1
    inv_ns = 1.0 / jnp.maximum(num_sample, 1e-10)
    inv_ns_m1 = 1.0 / jnp.maximum(num_sample - 1.0, 1e-10)
    bc1 = 1.0 / (1.0 - BETA1 ** t_new)
    bc2 = 1.0 / (1.0 - BETA2 ** t_new)
    scalars = jnp.stack(
        [num_sample, inv_ns, inv_ns_m1, bc1, bc2]).astype(jnp.float32)

    # tile sizes: up to ~2 MiB f32 x-tiles (fits comfortably double-buffered
    # inside the default scoped VMEM on v5e/v6e/v7x); batch axis aligned to 8
    # sublanes, channel axis to 128 lanes.  Reduction axis (N) gets the larger
    # target to minimize per-grid-step overhead.
    tn = _pick_tile(n, 1024, 8)
    tc = _pick_tile(c, 512, 128)
    grid = (c // tc, n // tn)

    kernel = functools.partial(_recorder_kernel, beta1=BETA1, beta2=BETA2)

    bytes_accessed = (n * c * np.dtype(g.dtype).itemsize   # read g once, native dtype
                      + 2 * 8 * c * 4                      # state slab in + out
                      + 5 * 4)                             # scalars
    stats_new = pl.pallas_call(
        kernel,
        out_shape=jax.ShapeDtypeStruct((8, c), jnp.float32),
        grid=grid,
        in_specs=[
            pl.BlockSpec(memory_space=pltpu.MemorySpace.SMEM),       # scalars (5,)
            pl.BlockSpec((8, tc), lambda ci, ni: (0, ci)),           # packed state
            pl.BlockSpec((tn, tc), lambda ci, ni: (ni, ci)),         # g tile
        ],
        out_specs=pl.BlockSpec((8, tc), lambda ci, ni: (0, ci)),
        scratch_shapes=[pltpu.VMEM((1, tc), jnp.float32),            # sum(x)
                        pltpu.VMEM((1, tc), jnp.float32)],           # sum(x*x)
        input_output_aliases={1: 0},        # in-place EMA update of the slab
        compiler_params=pltpu.CompilerParams(
            dimension_semantics=("parallel", "arbitrary")),
        cost_estimate=pl.CostEstimate(
            flops=4 * n * c + 32 * c,
            transcendentals=0,
            bytes_accessed=bytes_accessed),
    )(scalars, stats, g)

    # forward returns the input unchanged ("ans = g")
    return g, {"t": t_new, "stats": stats_new}


def _reference(g, state):
    """Pure-JAX reference of the PyTorch forward (world_size == 1)."""
    x = g.astype(jnp.float32)
    n = jnp.float32(x.shape[0])
    g2 = jnp.sum(x * x, 0) / jnp.maximum(n, 1e-10)
    gm = jnp.sum(x, 0) / jnp.maximum(n, 1e-10)
    ev_g = jnp.sum((x - gm[None, :]) ** 2, 0) / jnp.maximum(n - 1.0, 1e-10)
    t = state["t"] + 1.0
    m = BETA1 * state["m"] + (1 - BETA1) * gm
    v = BETA2 * state["v"] + (1 - BETA2) * g2
    ev = BETA2 * state["ev"] + (1 - BETA2) * ev_g
    mu_hat = m / (1 - BETA1 ** t)
    mu2_hat = v / (1 - BETA2 ** t)
    avg_var_hat = ev / (1 - BETA2 ** t)
    var_hat = mu2_hat - mu_hat ** 2
    return {"t": t, "m": m, "v": v, "ev": ev, "mu_hat": mu_hat,
            "mu2_hat": mu2_hat, "avg_var_hat": avg_var_hat, "var_hat": var_hat}


if __name__ == "__main__":
    N, C = 8, 128
    k1, k2 = jax.random.split(jax.random.PRNGKey(0))
    g1 = jax.random.normal(k1, (N, C), dtype=jnp.float32)
    g2_in = jax.random.normal(k2, (N, C), dtype=jnp.float32)

    state = init_state(C)

    # step 1
    out1, state = sync_single_statistic_recorder(g1, state)
    # step 2 (exercise t > 1 with a different input)
    out2, state = sync_single_statistic_recorder(g2_in, state)
    jax.block_until_ready((out1, out2, state))

    # verify against the pure-JAX reference (two steps)
    ref = {"t": jnp.zeros((), jnp.float32)}
    ref.update({k: jnp.zeros((C,), jnp.float32)
                for k in ("m", "v", "ev", "mu_hat", "mu2_hat",
                          "avg_var_hat", "var_hat")})
    ref = _reference(g1, ref)
    ref = _reference(g2_in, ref)

    got = unpack_state(state)
    assert np.allclose(np.asarray(out2), np.asarray(g2_in))  # passthrough
    for k in ("m", "v", "ev", "mu_hat", "mu2_hat", "avg_var_hat", "var_hat"):
        np.testing.assert_allclose(
            np.asarray(got[k]), np.asarray(ref[k]), rtol=1e-5, atol=1e-5)
    assert float(got["t"]) == 2.0

    print("KERNEL_OK")
</pallas_src>

<mosaic_0001>
module attributes {stable_mosaic.version = 11 : i64} {
  func.func @_recorder_kernel(%arg0: i32, %arg1: i32, %arg2: memref<5xf32, #tpu.memory_space<smem>>, %arg3: memref<8x128xf32, #tpu.memory_space<vmem>>, %arg4: memref<8x128xf32, #tpu.memory_space<vmem>>, %arg5: memref<8x128xf32, #tpu.memory_space<vmem>>, %arg6: memref<1x128xf32, #tpu.memory_space<vmem>>, %arg7: memref<1x128xf32, #tpu.memory_space<vmem>>) attributes {dimension_semantics = [#tpu.dimension_semantics<parallel>, #tpu.dimension_semantics<arbitrary>], iteration_bounds = array<i64: 1, 1>, scalar_prefetch = 0 : i64, scratch_operands = 2 : i64, tpu.core_type = #tpu.core_type<tc>, window_params = [{transform_indices = @transform_0, window_bounds = array<i64: 5>}, {transform_indices = @transform_1, window_bounds = array<i64: 8, 128>}, {transform_indices = @transform_2, window_bounds = array<i64: 8, 128>}, {transform_indices = @transform_3, window_bounds = array<i64: 8, 128>}]} {
    %c0_i32 = arith.constant 0 : i32
    %0 = arith.cmpi eq, %arg1, %c0_i32 : i32
    %1 = arith.extui %0 : i1 to i32
    %c0_i32_0 = arith.constant 0 : i32
    %2 = arith.cmpi ne, %1, %c0_i32_0 : i32
    scf.if %2 {
      %cst_13 = arith.constant 0.000000e+00 : f32
      %18 = vector.broadcast %cst_13 : f32 to vector<1x128xf32>
      %c0_14 = arith.constant 0 : index
      %c0_15 = arith.constant 0 : index
      %19 = vector.load %arg6[%c0_14, %c0_15] : memref<1x128xf32, #tpu.memory_space<vmem>>, vector<1x128xf32>
      tpu.vector_store %arg6[%c0_14, %c0_15], %18 {strides = array<i32>} : memref<1x128xf32, #tpu.memory_space<vmem>>, vector<1x128xf32>,
      %cst_16 = arith.constant 0.000000e+00 : f32
      %20 = vector.broadcast %cst_16 : f32 to vector<1x128xf32>
      %c0_17 = arith.constant 0 : index
      %c0_18 = arith.constant 0 : index
      %21 = vector.load %arg7[%c0_17, %c0_18] : memref<1x128xf32, #tpu.memory_space<vmem>>, vector<1x128xf32>
      tpu.vector_store %arg7[%c0_17, %c0_18], %20 {strides = array<i32>} : memref<1x128xf32, #tpu.memory_space<vmem>>, vector<1x128xf32>,
    } else {
    }
    %c0 = arith.constant 0 : index
    %c0_1 = arith.constant 0 : index
    %3 = vector.load %arg4[%c0, %c0_1] : memref<8x128xf32, #tpu.memory_space<vmem>>, vector<8x128xf32>
    %c0_2 = arith.constant 0 : index
    %c0_3 = arith.constant 0 : index
    %4 = vector.load %arg6[%c0_2, %c0_3] : memref<1x128xf32, #tpu.memory_space<vmem>>, vector<1x128xf32>
    %cst = arith.constant dense<0.000000e+00> : vector<128xf32>
    %5 = vector.multi_reduction <add>, %3, %cst [0] : vector<8x128xf32> to vector<128xf32>
    %6 = vector.shape_cast %5 : vector<128xf32> to vector<1x128xf32>
    %7 = arith.addf %4, %6 : vector<1x128xf32>
    %c0_4 = arith.constant 0 : index
    %c0_5 = arith.constant 0 : index
    %8 = vector.load %arg6[%c0_4, %c0_5] : memref<1x128xf32, #tpu.memory_space<vmem>>, vector<1x128xf32>
    tpu.vector_store %arg6[%c0_4, %c0_5], %7 {strides = array<i32>} : memref<1x128xf32, #tpu.memory_space<vmem>>, vector<1x128xf32>,
    %c0_6 = arith.constant 0 : index
    %c0_7 = arith.constant 0 : index
    %9 = vector.load %arg7[%c0_6, %c0_7] : memref<1x128xf32, #tpu.memory_space<vmem>>, vector<1x128xf32>
    %10 = arith.mulf %3, %3 : vector<8x128xf32>
    %cst_8 = arith.constant dense<0.000000e+00> : vector<128xf32>
    %11 = vector.multi_reduction <add>, %10, %cst_8 [0] : vector<8x128xf32> to vector<128xf32>
    %12 = vector.shape_cast %11 : vector<128xf32> to vector<1x128xf32>
    %13 = arith.addf %9, %12 : vector<1x128xf32>
    %c0_9 = arith.constant 0 : index
    %c0_10 = arith.constant 0 : index
    %14 = vector.load %arg7[%c0_9, %c0_10] : memref<1x128xf32, #tpu.memory_space<vmem>>, vector<1x128xf32>
    tpu.vector_store %arg7[%c0_9, %c0_10], %13 {strides = array<i32>} : memref<1x128xf32, #tpu.memory_space<vmem>>, vector<1x128xf32>,
    %c0_i32_11 = arith.constant 0 : i32
    %15 = arith.cmpi eq, %arg1, %c0_i32_11 : i32
    %16 = arith.extui %15 : i1 to i32
    %c0_i32_12 = arith.constant 0 : i32
    %17 = arith.cmpi ne, %16, %c0_i32_12 : i32
    scf.if %17 {
      %c0_13 = arith.constant 0 : index
      %18 = memref.load %arg2[%c0_13] : memref<5xf32, #tpu.memory_space<smem>>
      %c1 = arith.constant 1 : index
      %19 = memref.load %arg2[%c1] : memref<5xf32, #tpu.memory_space<smem>>
      %c2 = arith.constant 2 : index
      %20 = memref.load %arg2[%c2] : memref<5xf32, #tpu.memory_space<smem>>
      %c3 = arith.constant 3 : index
      %21 = memref.load %arg2[%c3] : memref<5xf32, #tpu.memory_space<smem>>
      %c4 = arith.constant 4 : index
      %22 = memref.load %arg2[%c4] : memref<5xf32, #tpu.memory_space<smem>>
      %c0_14 = arith.constant 0 : index
      %c0_15 = arith.constant 0 : index
      %23 = vector.load %arg6[%c0_14, %c0_15] : memref<1x128xf32, #tpu.memory_space<vmem>>, vector<1x128xf32>
      %c0_16 = arith.constant 0 : index
      %c0_17 = arith.constant 0 : index
      %24 = vector.load %arg7[%c0_16, %c0_17] : memref<1x128xf32, #tpu.memory_space<vmem>>, vector<1x128xf32>
      %25 = vector.broadcast %19 : f32 to vector<1x128xf32>
      %26 = arith.mulf %23, %25 : vector<1x128xf32>
      %27 = vector.broadcast %19 : f32 to vector<1x128xf32>
      %28 = arith.mulf %24, %27 : vector<1x128xf32>
      %29 = vector.broadcast %18 : f32 to vector<1x128xf32>
      %30 = arith.mulf %29, %26 : vector<1x128xf32>
      %31 = arith.mulf %30, %26 : vector<1x128xf32>
      %32 = arith.subf %24, %31 : vector<1x128xf32>
      %cst_18 = arith.constant 0.000000e+00 : f32
      %33 = vector.broadcast %cst_18 : f32 to vector<1x128xf32>
      %34 = arith.maximumf %32, %33 : vector<1x128xf32>
      %35 = vector.broadcast %20 : f32 to vector<1x128xf32>
      %36 = arith.mulf %34, %35 : vector<1x128xf32>
      %c0_19 = arith.constant 0 : index
      %c0_20 = arith.constant 0 : index
      %37 = vector.load %arg3[%c0_19, %c0_20] : memref<8x128xf32, #tpu.memory_space<vmem>>, vector<1x128xf32>
      %cst_21 = arith.constant 0.899999976 : f32
      %38 = vector.broadcast %cst_21 : f32 to vector<1x128xf32>
      %39 = arith.mulf %38, %37 : vector<1x128xf32>
      %cst_22 = arith.constant 1.000000e-01 : f32
      %40 = vector.broadcast %cst_22 : f32 to vector<1x128xf32>
      %41 = arith.mulf %40, %26 : vector<1x128xf32>
      %42 = arith.addf %39, %41 : vector<1x128xf32>
      %c1_23 = arith.constant 1 : index
      %c0_24 = arith.constant 0 : index
      %43 = vector.load %arg3[%c1_23, %c0_24] : memref<8x128xf32, #tpu.memory_space<vmem>>, vector<1x128xf32>
      %cst_25 = arith.constant 9.990000e-01 : f32
      %44 = vector.broadcast %cst_25 : f32 to vector<1x128xf32>
      %45 = arith.mulf %44, %43 : vector<1x128xf32>
      %cst_26 = arith.constant 1.000000e-03 : f32
      %46 = vector.broadcast %cst_26 : f32 to vector<1x128xf32>
      %47 = arith.mulf %46, %28 : vector<1x128xf32>
      %48 = arith.addf %45, %47 : vector<1x128xf32>
      %c2_27 = arith.constant 2 : index
      %c0_28 = arith.constant 0 : index
      %49 = vector.load %arg3[%c2_27, %c0_28] : memref<8x128xf32, #tpu.memory_space<vmem>>, vector<1x128xf32>
      %cst_29 = arith.constant 9.990000e-01 : f32
      %50 = vector.broadcast %cst_29 : f32 to vector<1x128xf32>
      %51 = arith.mulf %50, %49 : vector<1x128xf32>
      %cst_30 = arith.constant 1.000000e-03 : f32
      %52 = vector.broadcast %cst_30 : f32 to vector<1x128xf32>
      %53 = arith.mulf %52, %36 : vector<1x128xf32>
      %54 = arith.addf %51, %53 : vector<1x128xf32>
      %55 = vector.broadcast %21 : f32 to vector<1x128xf32>
      %56 = arith.mulf %42, %55 : vector<1x128xf32>
      %57 = vector.broadcast %22 : f32 to vector<1x128xf32>
      %58 = arith.mulf %48, %57 : vector<1x128xf32>
      %59 = vector.broadcast %22 : f32 to vector<1x128xf32>
      %60 = arith.mulf %54, %59 : vector<1x128xf32>
      %61 = arith.mulf %56, %56 : vector<1x128xf32>
      %62 = arith.subf %58, %61 : vector<1x128xf32>
      %c0_31 = arith.constant 0 : index
      %c0_32 = arith.constant 0 : index
      %63 = vector.load %arg5[%c0_31, %c0_32] : memref<8x128xf32, #tpu.memory_space<vmem>>, vector<1x128xf32>
      tpu.vector_store %arg5[%c0_31, %c0_32], %42 {strides = array<i32>} : memref<8x128xf32, #tpu.memory_space<vmem>>, vector<1x128xf32>,
      %c1_33 = arith.constant 1 : index
      %c0_34 = arith.constant 0 : index
      %64 = vector.load %arg5[%c1_33, %c0_34] : memref<8x128xf32, #tpu.memory_space<vmem>>, vector<1x128xf32>
      tpu.vector_store %arg5[%c1_33, %c0_34], %48 {strides = array<i32>} : memref<8x128xf32, #tpu.memory_space<vmem>>, vector<1x128xf32>,
      %c2_35 = arith.constant 2 : index
      %c0_36 = arith.constant 0 : index
      %65 = vector.load %arg5[%c2_35, %c0_36] : memref<8x128xf32, #tpu.memory_space<vmem>>, vector<1x128xf32>
      tpu.vector_store %arg5[%c2_35, %c0_36], %54 {strides = array<i32>} : memref<8x128xf32, #tpu.memory_space<vmem>>, vector<1x128xf32>,
      %c3_37 = arith.constant 3 : index
      %c0_38 = arith.constant 0 : index
      %66 = vector.load %arg5[%c3_37, %c0_38] : memref<8x128xf32, #tpu.memory_space<vmem>>, vector<1x128xf32>
      tpu.vector_store %arg5[%c3_37, %c0_38], %56 {strides = array<i32>} : memref<8x128xf32, #tpu.memory_space<vmem>>, vector<1x128xf32>,
      %c4_39 = arith.constant 4 : index
      %c0_40 = arith.constant 0 : index
      %67 = vector.load %arg5[%c4_39, %c0_40] : memref<8x128xf32, #tpu.memory_space<vmem>>, vector<1x128xf32>
      tpu.vector_store %arg5[%c4_39, %c0_40], %58 {strides = array<i32>} : memref<8x128xf32, #tpu.memory_space<vmem>>, vector<1x128xf32>,
      %c5 = arith.constant 5 : index
      %c0_41 = arith.constant 0 : index
      %68 = vector.load %arg5[%c5, %c0_41] : memref<8x128xf32, #tpu.memory_space<vmem>>, vector<1x128xf32>
      tpu.vector_store %arg5[%c5, %c0_41], %60 {strides = array<i32>} : memref<8x128xf32, #tpu.memory_space<vmem>>, vector<1x128xf32>,
      %c6 = arith.constant 6 : index
      %c0_42 = arith.constant 0 : index
      %69 = vector.load %arg5[%c6, %c0_42] : memref<8x128xf32, #tpu.memory_space<vmem>>, vector<1x128xf32>
      tpu.vector_store %arg5[%c6, %c0_42], %62 {strides = array<i32>} : memref<8x128xf32, #tpu.memory_space<vmem>>, vector<1x128xf32>,
      %cst_43 = arith.constant 0.000000e+00 : f32
      %70 = vector.broadcast %cst_43 : f32 to vector<1x128xf32>
      %c7 = arith.constant 7 : index
      %c0_44 = arith.constant 0 : index
      %71 = vector.load %arg5[%c7, %c0_44] : memref<8x128xf32, #tpu.memory_space<vmem>>, vector<1x128xf32>
      tpu.vector_store %arg5[%c7, %c0_44], %70 {strides = array<i32>} : memref<8x128xf32, #tpu.memory_space<vmem>>, vector<1x128xf32>,
    } else {
    }
    return
  }
  func.func @transform_0(%arg0: i32, %arg1: i32) -> i32 {
    %c0_i32 = arith.constant 0 : i32
    %c0_i32_0 = arith.constant 0 : i32
    return %c0_i32 : i32
  }
  func.func @transform_1(%arg0: i32, %arg1: i32) -> (i32, i32) {
    %c0_i32 = arith.constant 0 : i32
    %c0_i32_0 = arith.constant 0 : i32
    return %c0_i32, %arg0 : i32, i32
  }
  func.func @transform_2(%arg0: i32, %arg1: i32) -> (i32, i32) {
    %c0_i32 = arith.constant 0 : i32
    return %arg1, %arg0 : i32, i32
  }
  func.func @transform_3(%arg0: i32, %arg1: i32) -> (i32, i32) {
    %c0_i32 = arith.constant 0 : i32
    %c0_i32_0 = arith.constant 0 : i32
    return %c0_i32, %arg0 : i32, i32
  }
}

</mosaic_0001>

<bundles_post_ra>
// kernel: sync_single_statistic_recorder.1
= control target key start
LH: loop header
LB: loop body
LE: loop exit
PB: predicated region body
PF: predicated region fallthrough
CT: control target
= control target key end

     0   :  { %8 = vsyncpa [#allocation5], 0  ;;  %s189_s0 = inlined_call_operand.vmem [shape: f32[5], index: 0, kind: input, shape index: {}]   ;;  %s190_s1 = inlined_call_operand.vmem [shape: f32[8,128], index: 1, kind: input, shape index: {}, may-alias: {1,3}]   ;;  %s191_s2 = inlined_call_operand.vmem [shape: f32[8,128], index: 2, kind: input, shape index: {}]   ;;  %s192_s3 = inlined_call_operand.vmem [shape: f32[8,128], index: 3, kind: output, shape index: {}, may-alias: {1,3}]  }
   0x1   :  { %s15_s14 = sshll.u32 %s189_s0, 4  ;;  %s16_s14 = int_to_ptr.vmem [resolvable:$true] %s15_s14 }
   0x2   :  { %s111_s15 = scalar_lea.vmem %s16_s14, 16  ;;  %p116_p1 = scmp.lt.s32.totalorder %s16_s14, %s16_s14 }
   0x3   :  { %p112_p0 = scmp.ne.s32.totalorder %s16_s14, %s111_s15  ;;  %p117_p2 = scmp.lt.s32.totalorder %s111_s15, %s111_s15 }
   0x5   :  { %p118_p3 = por %p117_p2, %p116_p1 }
   0x7   :  { %p119_p4 = pnand %p118_p3, %p112_p0 }
   0x9   :  { %122 = shalt.err (!%p119_p4)
}
   0xa   :  { %s125_s16 = smov [#allocation4]  }
   0xb   :  { %18 = dma.vmem_to_smem %s16_s14, 16, %s125_s16, [#allocation5]  }
   0xc   :  { %123 = dma.done.wait [#allocation5], 16  }
   0xd   :  { %124 = vsyncadd [#allocation5], 4294967280 }
   0xe   :  { %26 = sfence }
   0xf   :  { %v33_v0 = vld [vmem:[%s191_s2] sm:$0xff]  ;;  %v126_v1 = vmov 0.0   ;;  %s105_s2 = sld [smem:[#allocation4 + $0x1]]  ;;  %s56_s20 = sld [smem:[#allocation4]] }
  0x10   :  { %31 = vst [vmem:[#allocation2] sm:$0x1] %v126_v1  ;;  %32 = vst [vmem:[#allocation3] sm:$0x1] %v126_v1  ;;  %v35_v2 = vrot.slane %v33_v0, 4  ;;  %v44_v3 = vmul.f32 %v33_v0, %v33_v0  ;;  %s107_s21 = sld [smem:[#allocation4 + $0x3]] }
  0x11   :  { %99 = vst [vmem:[%s192_s3 + $0x7] sm:$0x1] %v126_v1  ;;  %s159_s24 = sld [smem:[#allocation4 + $0x4]]  ;;  %s106_s27 = sld [smem:[#allocation4 + $0x2]] }
  0x12   :  { %v36_v4 = vadd.f32 %v35_v2, %v33_v0  ;;  %v45_v5 = vrot.slane %v44_v3, 4 }
  0x14   :  { %v37_v6 = vrot.slane %v36_v4, 2  ;;  %v46_v7 = vadd.f32 %v45_v5, %v44_v3 }
  0x15   :  { %v63_v19 = vstv %s105_s2  ;;  %v66_v22 = vstv %s56_s20 }
  0x16   :  { %v38_v8 = vadd.f32 %v37_v6, %v36_v4  ;;  %v47_v9 = vrot.slane %v46_v7, 2  ;;  %v85_v31 = vstv %s107_s21 }
  0x17   :  { %v34_v12 = vld [vmem:[#allocation2] sm:$0x1]  ;;  %v43_v15 = vld [vmem:[#allocation3] sm:$0x1]  ;;  %v87_v35 = vstv %s159_s24  ;;  %v71_v39 = vstv %s106_s27 }
  0x18   :  { %v39_v10 = vrot.slane %v38_v8, 1  ;;  %v48_v11 = vadd.f32 %v47_v9, %v46_v7  ;;  %v73_v20 = vld [vmem:[%s190_s1] sm:$0x1]  ;;  %v77_v23 = vld [vmem:[%s190_s1 + $0x1] sm:$0x1] }
  0x19   :  { %v74_v25 = vmul.f32 0.9, %v73_v20  ;;  %v78_v30 = vmul.f32 0.999, %v77_v23 }
  0x1a   :  { %v40_v13 = vadd.f32 %v39_v10, %v38_v8  ;;  %v49_v14 = vrot.slane %v48_v11, 1 }
  0x1c   :  { %v41_v16 = vadd.f32 %v40_v13, %v34_v12  ;;  %v50_v17 = vadd.f32 %v49_v14, %v48_v11 }
  0x1e   :  { %42 = vst [vmem:[#allocation2] sm:$0x1] %v41_v16  ;;  %v51_v18 = vadd.f32 %v50_v17, %v43_v15 }
  0x20   :  { %52 = vst [vmem:[#allocation3] sm:$0x1] %v51_v18 }
  0x25   :  { %v61_v21 = vld [vmem:[#allocation2] sm:$0x1] }
  0x26   :  { %v64_v24 = vmul.f32 %v63_v19, %v61_v21 }
  0x27   :  { %v62_v26 = vld [vmem:[#allocation3] sm:$0x1] }
  0x28   :  { %v75_v27 = vmul.f32 0.1, %v64_v24  ;;  %v65_v28 = vmul.f32 %v63_v19, %v62_v26  ;;  %v67_v29 = vmul.f32 %v66_v22, %v64_v24 }
  0x2a   :  { %v76_v32 = vadd.f32 %v75_v27, %v74_v25  ;;  %v68_v33 = vmul.f32 %v67_v29, %v64_v24  ;;  %v79_v34 = vmul.f32 0.001, %v65_v28 }
  0x2c   :  { %92 = vst [vmem:[%s192_s3] sm:$0x1] %v76_v32  ;;  %v86_v36 = vmul.f32 %v85_v31, %v76_v32  ;;  %v69_v37 = vsub.f32 %v62_v26, %v68_v33  ;;  %v80_v38 = vadd.f32 %v79_v34, %v78_v30 }
  0x2e   :  { %v88_v41 = vmul.f32 %v87_v35, %v80_v38  ;;  %v90_v42 = vmul.f32 %v86_v36, %v86_v36  ;;  %v70_v43 = vmax.f32 %v69_v37, 0.0 }
  0x30   :  { %v91_v44 = vsub.f32 %v88_v41, %v90_v42  ;;  %v72_v45 = vmul.f32 %v71_v39, %v70_v43 }
  0x32   :  { %v83_v47 = vmul.f32 0.001, %v72_v45 }
  0x33   :  { %v81_v40 = vld [vmem:[%s190_s1 + $0x2] sm:$0x1] }
  0x34   :  { %95 = vst [vmem:[%s192_s3 + $0x3] sm:$0x1] %v86_v36  ;;  %93 = vst [vmem:[%s192_s3 + $0x1] sm:$0x1] %v80_v38  ;;  %v82_v46 = vmul.f32 0.999, %v81_v40 }
  0x35   :  { %96 = vst [vmem:[%s192_s3 + $0x4] sm:$0x1] %v88_v41  ;;  %98 = vst [vmem:[%s192_s3 + $0x6] sm:$0x1] %v91_v44 }
  0x36   :  { %v84_v48 = vadd.f32 %v83_v47, %v82_v46 }
  0x38   :  { %94 = vst [vmem:[%s192_s3 + $0x2] sm:$0x1] %v84_v48  ;;  %v89_v49 = vmul.f32 %v87_v35, %v84_v48 }
  0x3a   :  { %97 = vst [vmem:[%s192_s3 + $0x5] sm:$0x1] %v89_v49 }
  0x3b   :  { %104 = vsyncpa [#allocation5], 1 }

</bundles_post_ra>
